<compile_context>
chip_gen: v6e
topology: v6e:2x2x1
jax: 0.10.0
libtpu: 0.0.40
codegen_flags: <defaults>
</compile_context>

<pallas_src>
import jax
import jax.numpy as jnp
from jax.experimental import pallas as pl
from jax.experimental.pallas import tpu as pltpu

GAIN_RANGE_DB = 24.0
DRIVE_MIN, DRIVE_MAX = 1.0, 10.0
_LOG2_10_OVER_20 = 0.16609640474436813  # log2(10)/20, for 10**(dB/20)

LANE = 128
SUBLANE = 8
ROWS_TARGET = 2048  # 2048 * 128 * 4 B = 1 MiB per f32 block


def _round_up(x, m):
    return (x + m - 1) // m * m


def _dafx_kernel(eff_ref, x_ref, o_ref):
    """One grid step: process a (1, rows_block, 128) tile of one batch row.

    eff_ref : SMEM ref, shape (B, 3) f32 -- precomputed (gain, drive, mix)
    x_ref   : VMEM ref, shape (1, rows_block, 128) -- signal tile
    o_ref   : VMEM ref, shape (1, rows_block, 128) -- output tile
    """
    b = pl.program_id(0)
    gain = eff_ref[b, 0]
    drive = eff_ref[b, 1]
    mix = eff_ref[b, 2]

    x = x_ref[...]                               # full 8x128-dense vregs
    wet = jnp.tanh(x * drive) * gain             # tanh -> EUP slot
    o_ref[...] = x + mix * (wet - x)             # dry/wet blend (1 mul saved)


@jax.jit
def dafx_forward(signal_bt, params_bp):
    """Run the synthetic DAFX on signal (B, T) with params (B, P>=3)."""
    B, T = signal_bt.shape

    # --- static tiling math (shapes are static under jit) -------------------
    rows_needed = _round_up(pl.cdiv(T, LANE), SUBLANE)   # multiple of 8
    rows_block = min(ROWS_TARGET, rows_needed)            # multiple of 8
    t_block = rows_block * LANE
    T_pad = _round_up(T, t_block)
    rows_total = T_pad // LANE
    grid = (B, rows_total // rows_block)

    # --- hoisted per-batch parameter mapping (computed once, not per tile) --
    gain_db = (params_bp[:, 0] - 0.5) * (2.0 * GAIN_RANGE_DB)
    gain = jnp.exp2(gain_db * _LOG2_10_OVER_20)           # == 10**(dB/20)
    drive = DRIVE_MIN + (DRIVE_MAX - DRIVE_MIN) * params_bp[:, 1]
    mix = params_bp[:, 2]
    eff = jnp.stack([gain, drive, mix], axis=1).astype(jnp.float32)  # (B, 3)

    # --- lay time out across both vreg axes (lane-dense, sublane-dense) -----
    x = signal_bt
    if T_pad != T:
        x = jnp.pad(x, ((0, 0), (0, T_pad - T)))
    x3 = x.reshape(B, rows_total, LANE)

    out3 = pl.pallas_call(
        _dafx_kernel,
        out_shape=jax.ShapeDtypeStruct((B, rows_total, LANE), signal_bt.dtype),
        grid_spec=pl.GridSpec(
            grid=grid,
            in_specs=[
                # Tiny per-batch effect params live in SMEM (scalar reads).
                pl.BlockSpec(memory_space=pltpu.MemorySpace.SMEM),
                # Signal: one batch row, rows_block x 128 time tile per step.
                pl.BlockSpec((1, rows_block, LANE), lambda b, t: (b, t, 0)),
            ],
            out_specs=pl.BlockSpec((1, rows_block, LANE), lambda b, t: (b, t, 0)),
        ),
        compiler_params=pltpu.CompilerParams(
            dimension_semantics=("parallel", "parallel")),
    )(eff, x3)

    out = out3.reshape(B, T_pad)
    if T_pad != T:
        out = out[:, :T]
    return out


class DAFXLayerPallas:
    """JAX/Pallas equivalent of the PyTorch DAFXLayer forward."""

    def __init__(self, epsilon: float = 0.001):
        self.epsilon = epsilon  # only used by the SPSA backward (not forward)

    def __call__(self, inputs):
        signal, params = inputs[0], inputs[1]
        # torch's .squeeze() drops ALL size-1 dims (collapsing B=1); we only
        # collapse the channel axis so the (B, T)/(B, P) contract holds.
        signal = signal.reshape(signal.shape[0], signal.shape[-1])
        params = params.reshape(params.shape[0], params.shape[-1])
        return dafx_forward(signal, params)


def _reference(signal_bt, params_bp):
    """Pure-JAX reference of the same synthetic DAFX for verification."""
    gain_db = (params_bp[:, 0:1] - 0.5) * 2.0 * GAIN_RANGE_DB
    gain = 10.0 ** (gain_db / 20.0)
    drive = DRIVE_MIN + (DRIVE_MAX - DRIVE_MIN) * params_bp[:, 1:2]
    mix = params_bp[:, 2:3]
    wet = jnp.tanh(drive * signal_bt) * gain
    return mix * wet + (1.0 - mix) * signal_bt


if __name__ == "__main__":
    key = jax.random.PRNGKey(0)
    k_sig, k_par = jax.random.split(key)

    B, T, P = 2, 3000, 3   # T not a multiple of the tile: exercises padding
    # Inputs carry an extra size-1 channel dim, mirroring the .squeeze() calls.
    signal = jax.random.normal(k_sig, (B, 1, T), dtype=jnp.float32)
    params = jax.random.uniform(k_par, (B, 1, P), dtype=jnp.float32)

    layer = DAFXLayerPallas(epsilon=0.001)
    out = layer([signal, params])
    out = jax.block_until_ready(out)

    ref = _reference(signal.reshape(B, T), params.reshape(B, P))
    assert out.shape == (B, T)
    assert jnp.allclose(out, ref, atol=1e-4, rtol=1e-4)

    print("KERNEL_OK")
</pallas_src>

<mosaic_0001>
module attributes {stable_mosaic.version = 11 : i64} {
  func.func @_dafx_kernel(%arg0: i32, %arg1: i32, %arg2: memref<2x3xf32, #tpu.memory_space<smem>>, %arg3: memref<1x24x128xf32, #tpu.memory_space<vmem>>, %arg4: memref<1x24x128xf32, #tpu.memory_space<vmem>>) attributes {dimension_semantics = [#tpu.dimension_semantics<parallel>, #tpu.dimension_semantics<parallel>], iteration_bounds = array<i64: 2, 1>, scalar_prefetch = 0 : i64, scratch_operands = 0 : i64, tpu.core_type = #tpu.core_type<tc>, window_params = [{transform_indices = @transform_0, window_bounds = array<i64: 2, 3>}, {transform_indices = @transform_1, window_bounds = array<i64: 1, 24, 128>}, {transform_indices = @transform_2, window_bounds = array<i64: 1, 24, 128>}]} {
    %0 = arith.index_cast %arg0 : i32 to index
    %c0 = arith.constant 0 : index
    %1 = memref.load %arg2[%0, %c0] : memref<2x3xf32, #tpu.memory_space<smem>>
    %2 = arith.index_cast %arg0 : i32 to index
    %c1 = arith.constant 1 : index
    %3 = memref.load %arg2[%2, %c1] : memref<2x3xf32, #tpu.memory_space<smem>>
    %4 = arith.index_cast %arg0 : i32 to index
    %c2 = arith.constant 2 : index
    %5 = memref.load %arg2[%4, %c2] : memref<2x3xf32, #tpu.memory_space<smem>>
    %c0_0 = arith.constant 0 : index
    %c0_1 = arith.constant 0 : index
    %c0_2 = arith.constant 0 : index
    %6 = vector.load %arg3[%c0_0, %c0_1, %c0_2] : memref<1x24x128xf32, #tpu.memory_space<vmem>>, vector<1x24x128xf32>
    %7 = vector.broadcast %3 : f32 to vector<1x24x128xf32>
    %8 = arith.mulf %6, %7 : vector<1x24x128xf32>
    %9 = math.tanh %8 : vector<1x24x128xf32>
    %10 = vector.broadcast %1 : f32 to vector<1x24x128xf32>
    %11 = arith.mulf %9, %10 : vector<1x24x128xf32>
    %12 = arith.subf %11, %6 : vector<1x24x128xf32>
    %13 = vector.broadcast %5 : f32 to vector<1x24x128xf32>
    %14 = arith.mulf %13, %12 : vector<1x24x128xf32>
    %15 = arith.addf %6, %14 : vector<1x24x128xf32>
    %c0_3 = arith.constant 0 : index
    %c0_4 = arith.constant 0 : index
    %c0_5 = arith.constant 0 : index
    %16 = vector.load %arg4[%c0_3, %c0_4, %c0_5] : memref<1x24x128xf32, #tpu.memory_space<vmem>>, vector<1x24x128xf32>
    tpu.vector_store %arg4[%c0_3, %c0_4, %c0_5], %15 {strides = array<i32>} : memref<1x24x128xf32, #tpu.memory_space<vmem>>, vector<1x24x128xf32>,
    return
  }
  func.func @transform_0(%arg0: i32, %arg1: i32) -> (i32, i32) {
    %c0_i32 = arith.constant 0 : i32
    %c0_i32_0 = arith.constant 0 : i32
    %c0_i32_1 = arith.constant 0 : i32
    return %c0_i32, %c0_i32_0 : i32, i32
  }
  func.func @transform_1(%arg0: i32, %arg1: i32) -> (i32, i32, i32) {
    %c0_i32 = arith.constant 0 : i32
    %c0_i32_0 = arith.constant 0 : i32
    return %arg0, %arg1, %c0_i32 : i32, i32, i32
  }
  func.func @transform_2(%arg0: i32, %arg1: i32) -> (i32, i32, i32) {
    %c0_i32 = arith.constant 0 : i32
    %c0_i32_0 = arith.constant 0 : i32
    return %arg0, %arg1, %c0_i32 : i32, i32, i32
  }
}

</mosaic_0001>

<bundles_post_ra>
// kernel: dafx_forward.1
= control target key start
LH: loop header
LB: loop body
LE: loop exit
PB: predicated region body
PF: predicated region fallthrough
CT: control target
= control target key end

     0   :  { %7 = vsyncpa [#allocation3], 0  ;;  %s442_s9 = smov 0   ;;  %s444_s10 = smov 0   ;;  %s505_s0 = inlined_call_operand.vmem [shape: f32[2,3], index: 0, kind: input, shape index: {}]   ;;  %s506_s1 = inlined_call_operand.vmem [shape: f32[2,24,128], index: 1, kind: input, shape index: {}]   ;;  %s507_s2 = inlined_call_operand.vmem [shape: f32[2,24,128], index: 2, kind: output, shape index: {}]  }
   0x1   :  { %s446_s11 = smov 0  }
   0x2 LB: > { %s329_s12 = sadd.s32 4294967295, %s424_s11   ;;  %s25_s13 = sadd.s32 1, %s420_s10  ;;  %s424_s11 = sphi %s446_s11, %s13_s11   ;;  %s420_s10 = sphi %s444_s10, %s511_s10   ;;  %s416_s9 = sphi %s442_s9, %s510_s9  }
   0x3   : > { %p27_p0 = scmp.ge.s32.totalorder %s25_s13, 2  ;;  %p331_p1 = scmp.ge.s32.totalorder %s424_s11, 1 }
   0x4   : > { %p107_p2 = scmp.lt.s32.totalorder %s424_s11, 3  ;;  %p467_p4 = scmp.eq.s32.totalorder %s329_s12, 0 }
   0x5   : > { %s513_s13 = smov (%p27_p0, %s25_s13), 0  ;;  %s120_s18 = sshll.u32 %s505_s0, 4  ;;  %s121_s18 = int_to_ptr.vmem [resolvable:$true] %s120_s18 }
   0x6   : > { %p463_p3 = pnand %p331_p1, %p107_p2  ;;  %s383_s19 = scalar_lea.vmem %s121_s18, 32 }
   0x7   : > { %p384_p7 = scmp.ne.s32.totalorder %s121_s18, %s383_s19  ;;  %p391_p11 = scmp.lt.s32.totalorder %s121_s18, %s121_s18 }
   0x8   : > { %p346_p5 = pneg %p463_p3  ;;  %p392_p12 = scmp.lt.s32.totalorder %s383_s19, %s383_s19 }
   0xa   : > { %p347_p6 = pnand %p467_p4, %p346_p5  ;;  %p393_p13 = por %p392_p12, %p391_p11 }
   0xc   : > { %p385_p8 = pneg %p347_p6 }
   0xe   : > { %p386_p9 = pnand %p385_p8, %p384_p7 }
  0x10   : > { %p387_p10 = pneg %p386_p9 }
  0x12   : > { %p394_p0 = pnand %p393_p13, %p387_p10 }
  0x14   : > { %397 = shalt.err (!%p394_p0)
}
  0x15   : > { %s426_s20 = smov [#allocation2]   ;;  %146 = sbr.rel (%p463_p3) target bundleno = 65 (0x41), region = 28 }
  0x16   : > { %349 = dma.vmem_to_smem (!%p347_p6), %s121_s18, 32, %s426_s20, [#allocation3]  }
  0x1a   : > { %411 = dma.done.wait (%p467_p4), [#allocation3], 32  }
  0x1b   : > { %413 = vsyncadd (%p467_p4), [#allocation3], 4294967264 }
  0x1c   : > { %152 = sfence }
  0x1d   : > { %p178_p1 = scmp.lt.s32.totalorder %s416_s9, 1  ;;  %s338_s21 = sshll.u32 %s416_s9, 7 }
  0x1e   : > { %s199_s22 = sadd.s32 1, %s338_s21  ;;  %s198_s28 = sld [smem:[#allocation2 + %s338_s21]] }
  0x1f   : > { %s515_s9 = smov (!%p178_p1, %s416_s9), 1  ;;  %s200_s23 = sld [smem:[#allocation2 + %s199_s22]] }
  0x20   : > { %s341_s24 = smul.u32 24, %s515_s9  ;;  %s201_s29 = sadd.s32 2, %s338_s21 }
  0x21   : > { %s202_s30 = sld [smem:[#allocation2 + %s201_s29]] }
  0x22   : > { %s185_s27 = scalar_lea.vmem %s506_s1, %s341_s24  ;;  %s195_s5 = scalar_lea.vmem %s507_s2, %s341_s24 }
  0x23   : > { %v203_v0 = vld [vmem:[%s185_s27] sm:$0xff]  ;;  %v204_v1 = vld [vmem:[%s185_s27 + $0x8] sm:$0xff]  ;;  %v205_v2 = vld [vmem:[%s185_s27 + $0x10] sm:$0xff] }
  0x24   : > { %v213_v7 = vstv %s198_s28 }
  0x25   : > { %v206_v3 = vstv %s200_s23 }
  0x26   : > { %v207_v4 = vmul.f32 %v206_v3, %v203_v0  ;;  %v208_v5 = vmul.f32 %v206_v3, %v204_v1  ;;  %v209_v6 = vmul.f32 %v206_v3, %v205_v2 }
  0x27   : > { %v220_v12 = vstv %s202_s30 }
  0x28   : > { %377 = vtanh.f32 %v207_v4 }
  0x29   : > { %379 = vtanh.f32 %v208_v5 }
  0x2a   : > { %381 = vtanh.f32 %v209_v6 }
  0x35   : > { %v378_v8 = vpop.eup %377 }
  0x36   : > { %v380_v9 = vpop.eup %379  ;;  %v214_v10 = vmul.f32 %v378_v8, %v213_v7 }
  0x37   : > { %v382_v11 = vpop.eup %381  ;;  %v215_v13 = vmul.f32 %v380_v9, %v213_v7 }
  0x38   : > { %v217_v14 = vsub.f32 %v214_v10, %v203_v0  ;;  %v216_v15 = vmul.f32 %v382_v11, %v213_v7 }
  0x39   : > { %v218_v16 = vsub.f32 %v215_v13, %v204_v1 }
  0x3a   : > { %v221_v17 = vmul.f32 %v220_v12, %v217_v14  ;;  %v219_v18 = vsub.f32 %v216_v15, %v205_v2 }
  0x3b   : > { %v222_v19 = vmul.f32 %v220_v12, %v218_v16 }
  0x3c   : > { %v224_v20 = vadd.f32 %v221_v17, %v203_v0  ;;  %v223_v21 = vmul.f32 %v220_v12, %v219_v18 }
  0x3d   : > { %v225_v22 = vadd.f32 %v222_v19, %v204_v1 }
  0x3e   : > { %227 = vst [vmem:[%s195_s5] sm:$0xff] %v224_v20  ;;  %v226_v23 = vadd.f32 %v223_v21, %v205_v2 }
  0x3f   : > { %228 = vst [vmem:[%s195_s5 + $0x8] sm:$0xff] %v225_v22 }
  0x40   : > { %229 = vst [vmem:[%s195_s5 + $0x10] sm:$0xff] %v226_v23 }
  0x41 PF: > { %s13_s11 = sadd.s32 1, %s424_s11   ;;  %s510_s9 = smov %s420_s10 }
  0x42   : > { %p10_p2 = scmp.ge.s32.totalorder %s13_s11, 4   ;;  %s511_s10 = smov %s513_s13 }
  0x44   :  { %12 = sbr.rel (!%p10_p2) target bundleno = 2 (0x2), region = 63 }
  0x49   :  { %260 = vsyncpa [#allocation3], 1 }
  0x4a   :  { %262 = vsyncpa [#allocation3 + $0x1], 1 }

</bundles_post_ra>
